<compile_context>
chip_gen: v7x
topology: tpu7x:2x2x1
jax: 0.10.0
libtpu: 0.0.40
codegen_flags: <defaults>
</compile_context>

<pallas_src>
import jax
import jax.numpy as jnp
from jax.experimental import pallas as pl
from jax.experimental.pallas import tpu as pltpu

_LANE = 128      # lane width: every feature dim is padded to a multiple of this
_SUBLANE = 16    # token-tile granularity (bf16 packs 16 sublanes per vreg)


def _round_up(x, m):
    return (x + m - 1) // m * m


def _pad2(a, shape):
    pads = [(0, t - s) for s, t in zip(a.shape, shape)]
    if all(p == (0, 0) for p in pads):
        return a
    return jnp.pad(a, pads)


def _make_gating_kernel(num_layers):
    """Kernel ref order: (x, w0, b0, w1, b1, ..., w_{L-1}, b_{L-1}, out)."""

    def kernel(x_ref, *refs):
        o_ref = refs[-1]
        # Cast to the MXU operand dtype in-kernel (VPU op, hidden under DMA/MXU)
        # instead of materializing a padded bf16 copy of x in HBM.
        h = x_ref[...].astype(jnp.bfloat16)
        for l in range(num_layers):
            w = refs[2 * l][...]                       # bf16 (Dl, Dl+1), resident
            b = refs[2 * l + 1][...]                   # f32  (1, Dl+1),  resident
            h = jnp.dot(h, w, preferred_element_type=jnp.float32) + b
            if l < num_layers - 1:                     # hidden layers get ReLU
                h = jnp.maximum(h, 0.0).astype(jnp.bfloat16)
        o_ref[...] = h.astype(o_ref.dtype)

    return kernel


def _vmem_need_bytes(ts, dims_pad, x_itemsize):
    """Rough per-call VMEM footprint for a given token tile."""
    num_layers = len(dims_pad) - 1
    need = 2 * ts * dims_pad[0] * x_itemsize           # double-buffered x tiles
    need += 2 * ts * dims_pad[-1] * 4                  # double-buffered f32 out tiles
    for l in range(num_layers):
        need += dims_pad[l] * dims_pad[l + 1] * 2      # bf16 W_l (single-buffered)
        need += dims_pad[l + 1] * 4                    # f32 b_l
    need += 2 * ts * max(dims_pad) * 4                 # f32 activation temps / slack
    return need


def gating_network_forward(x, weights, biases, *, token_tile=512):
    """Forward of GeneralizedGatingNetwork.

    weights[l]: (d_in_l, d_out_l)  (PyTorch Linear weight transposed)
    biases[l] : (d_out_l,)
    Returns logits of shape x.shape[:-1] + (num_experts,), f32.
    """
    num_layers = len(weights)
    input_dim = weights[0].shape[0]
    num_experts = weights[-1].shape[1]

    orig_shape = x.shape
    xf = x.reshape(-1, input_dim)
    s = xf.shape[0]
    x_itemsize = xf.dtype.itemsize

    # Lane-dense padding of every feature dim (multiple of 128).
    dims = [input_dim] + [w.shape[1] for w in weights]
    dims_pad = [_round_up(d, _LANE) for d in dims]

    # ---- Token tile selection -------------------------------------------------
    # Big tiles for DMA efficiency / low per-step overhead, rounded to 16 rows,
    # capped so the grid stays >= 2 (v7x megacore gets both TensorCores busy),
    # shrunk if the VMEM footprint would exceed the per-generation budget.
    if s < token_tile:
        ts = max(_SUBLANE, _round_up(s, _SUBLANE))
    else:
        ts = _round_up(token_tile, _SUBLANE)
    if s >= 2 * _SUBLANE and -(-s // ts) < 2:
        ts = _round_up(-(-s // 2), _SUBLANE)

    try:
        vmem_cap = int(pltpu.get_tpu_info().vmem_capacity_bytes)
    except Exception:
        vmem_cap = 64 * 1024 * 1024                    # v7x-safe fallback
    vmem_budget = int(0.75 * vmem_cap)
    while ts > _SUBLANE and _vmem_need_bytes(ts, dims_pad, x_itemsize) > vmem_budget:
        ts = max(_SUBLANE, _round_up(ts // 2, _SUBLANE))

    s_pad = _round_up(s, ts)

    # x keeps its native dtype (cast happens in-kernel); pad only when needed.
    x_p = _pad2(xf, (s_pad, dims_pad[0]))
    # Weights/biases are small, resident, and reused by every tile: pre-cast once.
    ws_p = [_pad2(w, (dims_pad[l], dims_pad[l + 1])).astype(jnp.bfloat16)
            for l, w in enumerate(weights)]
    bs_p = [_pad2(b.reshape(1, -1), (1, dims_pad[l + 1])).astype(jnp.float32)
            for l, b in enumerate(biases)]

    in_specs = [pl.BlockSpec((ts, dims_pad[0]), lambda i: (i, 0))]
    flat_params = []
    for l in range(num_layers):
        d_in, d_out = dims_pad[l], dims_pad[l + 1]
        # Constant index_map -> resident; single-buffer (double-buffering a
        # resident weight is pure VMEM waste; frees room on v7x's 64 MiB).
        in_specs.append(pl.BlockSpec((d_in, d_out), lambda i: (0, 0),
                                     pipeline_mode=pl.Buffered(1)))
        in_specs.append(pl.BlockSpec((1, d_out), lambda i: (0, 0),
                                     pipeline_mode=pl.Buffered(1)))
        flat_params.extend([ws_p[l], bs_p[l]])

    need = _vmem_need_bytes(ts, dims_pad, x_itemsize)
    vmem_limit = max(16 * 1024 * 1024, min(vmem_budget, need + 8 * 1024 * 1024))

    # TODO(synk): for MLP gating with very large weights (tens of MiB bf16), add a
    # trailing "arbitrary" K-reduction grid axis with an f32 VMEM accumulator
    # instead of keeping W fully resident (required to fit v7x's 64 MiB VMEM).

    out_padded = pl.pallas_call(
        _make_gating_kernel(num_layers),
        out_shape=jax.ShapeDtypeStruct((s_pad, dims_pad[-1]), jnp.float32),
        grid_spec=pltpu.PrefetchScalarGridSpec(
            num_scalar_prefetch=0,
            grid=(s_pad // ts,),
            in_specs=in_specs,
            out_specs=pl.BlockSpec((ts, dims_pad[-1]), lambda i: (i, 0)),
        ),
        compiler_params=pltpu.CompilerParams(
            dimension_semantics=("parallel",),         # shard token tiles across TCs
            vmem_limit_bytes=int(vmem_limit)),
    )(x_p, *flat_params)

    logits = out_padded[:s, :num_experts]
    return logits.reshape(orig_shape[:-1] + (num_experts,)).astype(jnp.float32)


# ---------------------------------------------------------------------------
# Pure-JAX reference of the module's forward (f32 everywhere).
# ---------------------------------------------------------------------------
def reference_forward(x, weights, biases):
    h = x.reshape(-1, weights[0].shape[0]).astype(jnp.float32)
    for l, (w, b) in enumerate(zip(weights, biases)):
        h = h @ w + b
        if l < len(weights) - 1:
            h = jnp.maximum(h, 0.0)
    return h.reshape(x.shape[:-1] + (weights[-1].shape[1],))


# ---------------------------------------------------------------------------
if __name__ == "__main__":
    batch, seq, input_dim, num_experts = 2, 8, 32, 4
    hidden = 64

    key = jax.random.PRNGKey(0)
    kx, k0, k1, k2, k3, k4, k5, kc = jax.random.split(key, 8)
    x = jax.random.normal(kx, (batch, seq, input_dim), jnp.float32)

    # Case A: hidden_dims=None  ->  single Linear(input_dim, num_experts)
    w_gate = (jax.random.normal(k0, (input_dim, num_experts), jnp.float32)
              / jnp.sqrt(jnp.float32(input_dim)))
    b_gate = jax.random.normal(k1, (num_experts,), jnp.float32) * 0.01
    weights_a = [w_gate]
    biases_a = [b_gate]

    # Case B: hidden_dims=[64]  ->  Linear -> ReLU -> Linear(num_experts)
    w0 = (jax.random.normal(k2, (input_dim, hidden), jnp.float32)
          / jnp.sqrt(jnp.float32(input_dim)))
    b0 = jax.random.normal(k3, (hidden,), jnp.float32) * 0.01
    w1 = (jax.random.normal(k4, (hidden, num_experts), jnp.float32)
          / jnp.sqrt(jnp.float32(hidden)))
    b1 = jax.random.normal(k5, (num_experts,), jnp.float32) * 0.01
    weights_b = [w0, w1]
    biases_b = [b0, b1]

    # Case C: more tokens -> exercises the multi-tile grid / grid>=2 cap path.
    x_big = jax.random.normal(kc, (4, 128, input_dim), jnp.float32)

    fwd = jax.jit(gating_network_forward)

    out_a = fwd(x, weights_a, biases_a)
    out_b = fwd(x, weights_b, biases_b)
    out_c = fwd(x_big, weights_b, biases_b)
    jax.block_until_ready((out_a, out_b, out_c))

    ref_a = reference_forward(x, weights_a, biases_a)
    ref_b = reference_forward(x, weights_b, biases_b)
    ref_c = reference_forward(x_big, weights_b, biases_b)

    assert out_a.shape == (batch, seq, num_experts), out_a.shape
    assert out_b.shape == (batch, seq, num_experts), out_b.shape
    assert out_c.shape == (4, 128, num_experts), out_c.shape
    # bf16 MXU operands -> loose tolerance vs full-f32 reference.
    err_a = float(jnp.max(jnp.abs(out_a - ref_a)))
    err_b = float(jnp.max(jnp.abs(out_b - ref_b)))
    err_c = float(jnp.max(jnp.abs(out_c - ref_c)))
    assert err_a < 5e-2, err_a
    assert err_b < 5e-2, err_b
    assert err_c < 5e-2, err_c

    print("KERNEL_OK")
</pallas_src>

<mosaic_0001>
module attributes {stable_mosaic.version = 11 : i64} {
  func.func @kernel(%arg0: i32, %arg1: memref<16x128xf32, #tpu.memory_space<vmem>>, %arg2: memref<128x128xbf16, #tpu.memory_space<vmem>>, %arg3: memref<1x128xf32, #tpu.memory_space<vmem>>, %arg4: memref<16x128xf32, #tpu.memory_space<vmem>>) attributes {dimension_semantics = [#tpu.dimension_semantics<parallel>], iteration_bounds = array<i64: 1>, scalar_prefetch = 0 : i64, scratch_operands = 0 : i64, tpu.core_type = #tpu.core_type<tc>, window_params = [{transform_indices = @transform_0, window_bounds = array<i64: 16, 128>}, {pipeline_mode = #tpu.pipeline_mode<synchronous>, transform_indices = @transform_1, window_bounds = array<i64: 128, 128>}, {pipeline_mode = #tpu.pipeline_mode<synchronous>, transform_indices = @transform_2, window_bounds = array<i64: 1, 128>}, {transform_indices = @transform_3, window_bounds = array<i64: 16, 128>}]} {
    %c0 = arith.constant 0 : index
    %c0_0 = arith.constant 0 : index
    %0 = vector.load %arg1[%c0, %c0_0] : memref<16x128xf32, #tpu.memory_space<vmem>>, vector<16x128xf32>
    %1 = arith.truncf %0 : vector<16x128xf32> to vector<16x128xbf16>
    %c0_1 = arith.constant 0 : index
    %c0_2 = arith.constant 0 : index
    %2 = vector.load %arg2[%c0_1, %c0_2] : memref<128x128xbf16, #tpu.memory_space<vmem>>, vector<128x128xbf16>
    %c0_3 = arith.constant 0 : index
    %c0_4 = arith.constant 0 : index
    %3 = vector.load %arg3[%c0_3, %c0_4] : memref<1x128xf32, #tpu.memory_space<vmem>>, vector<1x128xf32>
    %cst = arith.constant dense<0.000000e+00> : vector<16x128xf32>
    %4 = tpu.matmul %1, %2, %cst {dimension_numbers = #tpu.dot_dimension_numbers<[1], [0], [0], [1], [0, 0, 1, 1], [], []>} : vector<16x128xbf16>, vector<128x128xbf16>, vector<16x128xf32> -> vector<16x128xf32>
    %5 = vector.broadcast %3 : vector<1x128xf32> to vector<16x128xf32>
    %6 = arith.addf %4, %5 : vector<16x128xf32>
    %c0_5 = arith.constant 0 : index
    %c0_6 = arith.constant 0 : index
    %7 = vector.load %arg4[%c0_5, %c0_6] : memref<16x128xf32, #tpu.memory_space<vmem>>, vector<16x128xf32>
    tpu.vector_store %arg4[%c0_5, %c0_6], %6 {strides = array<i32>} : memref<16x128xf32, #tpu.memory_space<vmem>>, vector<16x128xf32>,
    return
  }
  func.func @transform_0(%arg0: i32) -> (i32, i32) {
    %c0_i32 = arith.constant 0 : i32
    %c0_i32_0 = arith.constant 0 : i32
    return %arg0, %c0_i32 : i32, i32
  }
  func.func @transform_1(%arg0: i32) -> (i32, i32) {
    %c0_i32 = arith.constant 0 : i32
    %c0_i32_0 = arith.constant 0 : i32
    %c0_i32_1 = arith.constant 0 : i32
    return %c0_i32, %c0_i32_0 : i32, i32
  }
  func.func @transform_2(%arg0: i32) -> (i32, i32) {
    %c0_i32 = arith.constant 0 : i32
    %c0_i32_0 = arith.constant 0 : i32
    %c0_i32_1 = arith.constant 0 : i32
    return %c0_i32, %c0_i32_0 : i32, i32
  }
  func.func @transform_3(%arg0: i32) -> (i32, i32) {
    %c0_i32 = arith.constant 0 : i32
    %c0_i32_0 = arith.constant 0 : i32
    return %arg0, %c0_i32 : i32, i32
  }
}

</mosaic_0001>

<bundles_post_ra>
// kernel: gating_network_forward.1
= control target key start
LH: loop header
LB: loop body
LE: loop exit
PB: predicated region body
PF: predicated region fallthrough
CT: control target
= control target key end

     0   :  { %v184_v0 = vmov 0.0   ;;  %vm185_vm0 = vmmov 0   ;;  %s245_s1 = inlined_call_operand.vmem [shape: bf16[128,128], index: 1, kind: input, shape index: {}]   ;;  %s246_s0 = inlined_call_operand.vmem [shape: f32[16,128], index: 0, kind: input, shape index: {}]   ;;  %s247_s2 = inlined_call_operand.vmem [shape: f32[1,128], index: 2, kind: input, shape index: {}]   ;;  %s248_s3 = inlined_call_operand.vmem [shape: f32[16,128], index: 3, kind: output, shape index: {}]  }
   0x1   :  { %154 = vmatprep.subr.bf16.mxu0 %v184_v0  ;;  %v176_v1 = vld [vmem:[%s245_s1] sm:$0xff]   ;;  %170 = vmatprep.mubr.msk.bf16.mxu0 %vm185_vm0, %v184_v0  ;;  %v177_v2 = vld [vmem:[%s245_s1 + $0x8] sm:$0xff]   ;;  %v178_v3 = vld [vmem:[%s245_s1 + $0x10] sm:$0xff]  }
   0x2   :  { %155 = vmatpush3.bf16.msra.mxu0 %v176_v1  ;;  %v179_v4 = vld [vmem:[%s245_s1 + $0x18] sm:$0xff]   ;;  %v180_v5 = vld [vmem:[%s245_s1 + $0x20] sm:$0xff]   ;;  %v181_v6 = vld [vmem:[%s245_s1 + $0x28] sm:$0xff]  }
   0x3   :  { %156 = vmatprep.subr.bf16.mxu0 %v184_v0  ;;  %v182_v7 = vld [vmem:[%s245_s1 + $0x30] sm:$0xff]   ;;  %v183_v8 = vld [vmem:[%s245_s1 + $0x38] sm:$0xff]   ;;  %v15_v9 = vld [vmem:[%s246_s0] sm:$0xff] }
   0x4   :  { %v16_v10 = vld [vmem:[%s246_s0 + $0x8] sm:$0xff]  ;;  %v136_v12 = vld [vmem:[%s247_s2] ss:$0 sm:$0xff] }
   0x5   :  { %v17_v11 = vpack.c.bf16 %v16_v10, %v15_v9 }
   0x6   :  { %157 = vmatpush3.bf16.msra.mxu0 %v177_v2 }
   0x7   :  { %158 = vmatprep.subr.bf16.mxu0 %v184_v0 }
   0xa   :  { %159 = vmatpush3.bf16.msra.mxu0 %v178_v3 }
   0xb   :  { %160 = vmatprep.subr.bf16.mxu0 %v184_v0 }
   0xe   :  { %161 = vmatpush3.bf16.msra.mxu0 %v179_v4 }
   0xf   :  { %162 = vmatprep.subr.bf16.mxu0 %v184_v0 }
  0x12   :  { %163 = vmatpush3.bf16.msra.mxu0 %v180_v5 }
  0x13   :  { %164 = vmatprep.subr.bf16.mxu0 %v184_v0 }
  0x16   :  { %165 = vmatpush3.bf16.msra.mxu0 %v181_v6 }
  0x17   :  { %166 = vmatprep.subr.bf16.mxu0 %v184_v0 }
  0x1a   :  { %167 = vmatpush3.bf16.msra.mxu0 %v182_v7 }
  0x1b   :  { %168 = vmatprep.subr.bf16.mxu0 %v184_v0 }
  0x1e   :  { %169 = vmatpush3.bf16.msra.mxu0 %v183_v8 }
  0x21   :  { %171 = vmatmul.mubr.bf16.vlgmr.msra.gmra.mrb[0].mxu0 %v17_v11 }
  0xf4   :  { %v123_v13 = vpop.f32.mrb[0].mxu0 }
  0xf5   :  { %v124_v14 = vadd.f32 %v136_v12, %v123_v13  ;;  %v172_v15 = vpop.f32.mrb[1].mxu0 }
  0xf6   :  { %v126_v16 = vpop.f32.mrb[2].mxu0 }
  0xf7   :  { %130 = vst [vmem:[%s248_s3] sm:$0xff] %v124_v14  ;;  %v127_v17 = vadd.f32 %v136_v12, %v126_v16  ;;  %v173_v18 = vpop.f32.mrb[3].mxu0 }
  0xf9   :  { %131 = vst [vmem:[%s248_s3 + $0x8] sm:$0xff] %v127_v17 }

</bundles_post_ra>
